<compile_context>
chip_gen: v7x
topology: tpu7x:2x2x1
jax: 0.10.0
libtpu: 0.0.40
codegen_flags: <defaults>
</compile_context>

<pallas_src>
import functools

import jax
import jax.numpy as jnp
from jax.experimental import pallas as pl
from jax.experimental.pallas import tpu as pltpu


def _round_up(x, m):
    return ((x + m - 1) // m) * m


def _block_kernel(x_ref, scale_ref, shift_ref,
                  w1_ref, b1_ref, w2_ref, b2_ref,
                  w3_ref, b3_ref, w4_ref, b4_ref,
                  o_ref):
    # ---- short: folded BatchNorm1d + ReLU (VPU, f32) ----
    x = x_ref[...].astype(jnp.float32)
    h = jnp.maximum(x * scale_ref[...] + shift_ref[...], 0.0)

    # ---- density: 4 x Linear (+ReLU on first 3) on the MXU ----
    # Weights are bf16 (default) or f32; activations cast to the weight dtype
    # right before each dot, accumulation stays f32.
    h = jnp.dot(h.astype(w1_ref.dtype), w1_ref[...],
                preferred_element_type=jnp.float32) + b1_ref[...]
    h = jnp.maximum(h, 0.0)
    h = jnp.dot(h.astype(w2_ref.dtype), w2_ref[...],
                preferred_element_type=jnp.float32) + b2_ref[...]
    h = jnp.maximum(h, 0.0)
    h = jnp.dot(h.astype(w3_ref.dtype), w3_ref[...],
                preferred_element_type=jnp.float32) + b3_ref[...]
    h = jnp.maximum(h, 0.0)
    h = jnp.dot(h.astype(w4_ref.dtype), w4_ref[...],
                preferred_element_type=jnp.float32) + b4_ref[...]
    # Dropout(0.5) in eval mode == identity.

    # Weights' lane dims are padded to 128; store only the real output lanes.
    o_ref[...] = h[:, :o_ref.shape[1]].astype(o_ref.dtype)


@functools.partial(jax.jit, static_argnames=("batch_tile", "use_bf16_matmul"))
def block_forward(x, params, *, batch_tile=4096, use_bf16_matmul=True):
    """x: (N, in_features) float32. params: dict of BN + Linear params."""
    n, in_f = x.shape
    h1 = params["w1"].shape[1]
    h2 = params["w2"].shape[1]
    h3 = params["w3"].shape[1]
    out_f = params["w4"].shape[1]

    # Lane-pad only the matmul lane dims (weights / biases / hidden widths) to
    # multiples of 128.  x and the output keep their true widths in HBM:
    # blocks whose last dim equals the full array dim are legal, and this cuts
    # HBM read/write traffic ~5x vs. padding in/out features to 128.
    h1_p = _round_up(h1, 128)
    h2_p = _round_up(h2, 128)
    h3_p = _round_up(h3, 128)
    out_p = _round_up(out_f, 128)

    # Batch tiling: large tiles amortize the ~0.35us/step grid overhead, but
    # aim for >=4 grid steps so v7x's two TensorCores both get work and the
    # padded tail tile stays small.  Tiles are 8-aligned.
    bt = min(batch_tile, _round_up(n, 8))
    bt = min(bt, _round_up(max(-(-n // 4), 8), 8))
    bt = max(bt, 8)
    n_p = _round_up(n, bt)

    mat_dtype = jnp.bfloat16 if use_bf16_matmul else x.dtype

    def pad2(a, rows, cols, dtype=None):
        a = jnp.pad(a, ((0, rows - a.shape[0]), (0, cols - a.shape[1])))
        return a.astype(dtype) if dtype is not None else a

    # Fold BN into scale/shift once (plain JAX, no per-step rsqrt).
    scale = params["gamma"] * jax.lax.rsqrt(params["var"] + 1e-5)   # (1, in_f)
    shift = params["beta"] - params["mean"] * scale                 # (1, in_f)

    w1 = pad2(params["w1"], in_f, h1_p, mat_dtype); b1 = pad2(params["b1"], 1, h1_p)
    w2 = pad2(params["w2"], h1_p, h2_p, mat_dtype); b2 = pad2(params["b2"], 1, h2_p)
    w3 = pad2(params["w3"], h2_p, h3_p, mat_dtype); b3 = pad2(params["b3"], 1, h3_p)
    w4 = pad2(params["w4"], h3_p, out_p, mat_dtype); b4 = pad2(params["b4"], 1, out_p)

    # Only the batch dim is padded in HBM (rows sliced off afterwards).
    x_p = jnp.pad(x, ((0, n_p - n), (0, 0)))

    grid = (n_p // bt,)

    def row_spec(feat):
        return pl.BlockSpec((bt, feat), lambda i: (i, 0))

    def full_spec(arr):
        # Constant block index -> DMA'd once, stays VMEM-resident across steps.
        return pl.BlockSpec(arr.shape, lambda i: (0,) * arr.ndim)

    ordered = [scale, shift, w1, b1, w2, b2, w3, b3, w4, b4]

    out_padded = pl.pallas_call(
        _block_kernel,
        out_shape=jax.ShapeDtypeStruct((n_p, out_f), x.dtype),
        grid_spec=pltpu.PrefetchScalarGridSpec(
            num_scalar_prefetch=0,
            grid=grid,
            in_specs=[row_spec(in_f)] + [full_spec(a) for a in ordered],
            out_specs=row_spec(out_f),
        ),
        compiler_params=pltpu.CompilerParams(
            dimension_semantics=("parallel",)),
    )(x_p, *ordered)

    # Slice padded batch rows back off outside the kernel.
    return out_padded[:n]


def init_params(key, in_f, h1, h2, h3, out_f, dtype=jnp.float32):
    """Deterministic synthetic parameters (shapes from block.__init__)."""
    ks = jax.random.split(key, 12)

    def linear(kw, kb, fan_in, fan_out):
        # torch Linear init: U(-1/sqrt(fan_in), 1/sqrt(fan_in)); weight stored
        # here already transposed to (in, out).
        bound = 1.0 / jnp.sqrt(fan_in)
        w = jax.random.uniform(kw, (fan_in, fan_out), dtype, -bound, bound)
        b = jax.random.uniform(kb, (1, fan_out), dtype, -bound, bound)
        return w, b

    w1, b1 = linear(ks[0], ks[1], in_f, h1)
    w2, b2 = linear(ks[2], ks[3], h1, h2)
    w3, b3 = linear(ks[4], ks[5], h2, h3)
    w4, b4 = linear(ks[6], ks[7], h3, out_f)
    return dict(
        # BatchNorm1d(in_f): affine + running stats (synthetic, non-trivial)
        gamma=(1.0 + 0.1 * jax.random.normal(ks[8], (1, in_f), dtype)),
        beta=0.1 * jax.random.normal(ks[9], (1, in_f), dtype),
        mean=0.05 * jax.random.normal(ks[10], (1, in_f), dtype),
        var=(1.0 + 0.1 * jax.random.uniform(ks[11], (1, in_f), dtype)),
        w1=w1, b1=b1, w2=w2, b2=b2, w3=w3, b3=b3, w4=w4, b4=b4,
    )


def _reference(x, p):
    h = (x - p["mean"]) * jax.lax.rsqrt(p["var"] + 1e-5) * p["gamma"] + p["beta"]
    h = jnp.maximum(h, 0.0)
    h = jnp.maximum(h @ p["w1"] + p["b1"], 0.0)
    h = jnp.maximum(h @ p["w2"] + p["b2"], 0.0)
    h = jnp.maximum(h @ p["w3"] + p["b3"], 0.0)
    return h @ p["w4"] + p["b4"]


if __name__ == "__main__":
    in_features, hidden1, hidden2, hidden3, out_features = 32, 64, 64, 32, 16
    batch = 8

    key = jax.random.PRNGKey(0)
    kx, kp = jax.random.split(key)
    x = jax.random.normal(kx, (batch, in_features), jnp.float32)
    params = init_params(kp, in_features, hidden1, hidden2, hidden3, out_features)
    ref = _reference(x, params)

    # Default path: bf16 MXU operands, f32 accumulation (looser tolerance).
    out_bf16 = jax.block_until_ready(block_forward(x, params))
    assert out_bf16.shape == (batch, out_features)
    assert jnp.allclose(out_bf16, ref, atol=5e-2, rtol=5e-2), "bf16 path mismatch"

    # f32 path: tight check of the kernel structure / BN folding / padding.
    out_f32 = jax.block_until_ready(block_forward(x, params, use_bf16_matmul=False))
    assert jnp.allclose(out_f32, ref, atol=1e-4, rtol=1e-4), "f32 path mismatch"

    # Multi-step grid exercise (batch not a multiple of the tile).
    batch2 = 40
    x2 = jax.random.normal(jax.random.PRNGKey(1), (batch2, in_features), jnp.float32)
    out2 = jax.block_until_ready(block_forward(x2, params))
    assert out2.shape == (batch2, out_features)
    assert jnp.allclose(out2, _reference(x2, params), atol=5e-2, rtol=5e-2), \
        "multi-step grid mismatch"

    print("KERNEL_OK")
</pallas_src>

<mosaic_0001>
module attributes {stable_mosaic.version = 11 : i64} {
  func.func @_block_kernel(%arg0: i32, %arg1: memref<8x32xf32, #tpu.memory_space<vmem>>, %arg2: memref<1x32xf32, #tpu.memory_space<vmem>>, %arg3: memref<1x32xf32, #tpu.memory_space<vmem>>, %arg4: memref<32x128xbf16, #tpu.memory_space<vmem>>, %arg5: memref<1x128xf32, #tpu.memory_space<vmem>>, %arg6: memref<128x128xbf16, #tpu.memory_space<vmem>>, %arg7: memref<1x128xf32, #tpu.memory_space<vmem>>, %arg8: memref<128x128xbf16, #tpu.memory_space<vmem>>, %arg9: memref<1x128xf32, #tpu.memory_space<vmem>>, %arg10: memref<128x128xbf16, #tpu.memory_space<vmem>>, %arg11: memref<1x128xf32, #tpu.memory_space<vmem>>, %arg12: memref<8x16xf32, #tpu.memory_space<vmem>>) attributes {dimension_semantics = [#tpu.dimension_semantics<parallel>], iteration_bounds = array<i64: 1>, scalar_prefetch = 0 : i64, scratch_operands = 0 : i64, tpu.core_type = #tpu.core_type<tc>, window_params = [{transform_indices = @transform_0, window_bounds = array<i64: 8, 32>}, {pipeline_mode = #tpu.pipeline_mode<synchronous>, transform_indices = @transform_1, window_bounds = array<i64: 1, 32>}, {pipeline_mode = #tpu.pipeline_mode<synchronous>, transform_indices = @transform_2, window_bounds = array<i64: 1, 32>}, {pipeline_mode = #tpu.pipeline_mode<synchronous>, transform_indices = @transform_3, window_bounds = array<i64: 32, 128>}, {pipeline_mode = #tpu.pipeline_mode<synchronous>, transform_indices = @transform_4, window_bounds = array<i64: 1, 128>}, {pipeline_mode = #tpu.pipeline_mode<synchronous>, transform_indices = @transform_5, window_bounds = array<i64: 128, 128>}, {pipeline_mode = #tpu.pipeline_mode<synchronous>, transform_indices = @transform_6, window_bounds = array<i64: 1, 128>}, {pipeline_mode = #tpu.pipeline_mode<synchronous>, transform_indices = @transform_7, window_bounds = array<i64: 128, 128>}, {pipeline_mode = #tpu.pipeline_mode<synchronous>, transform_indices = @transform_8, window_bounds = array<i64: 1, 128>}, {pipeline_mode = #tpu.pipeline_mode<synchronous>, transform_indices = @transform_9, window_bounds = array<i64: 128, 128>}, {pipeline_mode = #tpu.pipeline_mode<synchronous>, transform_indices = @transform_10, window_bounds = array<i64: 1, 128>}, {transform_indices = @transform_11, window_bounds = array<i64: 8, 16>}]} {
    %c0 = arith.constant 0 : index
    %c0_0 = arith.constant 0 : index
    %0 = vector.load %arg1[%c0, %c0_0] : memref<8x32xf32, #tpu.memory_space<vmem>>, vector<8x32xf32>
    %c0_1 = arith.constant 0 : index
    %c0_2 = arith.constant 0 : index
    %1 = vector.load %arg2[%c0_1, %c0_2] : memref<1x32xf32, #tpu.memory_space<vmem>>, vector<1x32xf32>
    %2 = vector.broadcast %1 : vector<1x32xf32> to vector<8x32xf32>
    %3 = arith.mulf %0, %2 : vector<8x32xf32>
    %c0_3 = arith.constant 0 : index
    %c0_4 = arith.constant 0 : index
    %4 = vector.load %arg3[%c0_3, %c0_4] : memref<1x32xf32, #tpu.memory_space<vmem>>, vector<1x32xf32>
    %5 = vector.broadcast %4 : vector<1x32xf32> to vector<8x32xf32>
    %6 = arith.addf %3, %5 : vector<8x32xf32>
    %cst = arith.constant 0.000000e+00 : f32
    %7 = vector.broadcast %cst : f32 to vector<8x32xf32>
    %8 = arith.maximumf %6, %7 : vector<8x32xf32>
    %9 = arith.truncf %8 : vector<8x32xf32> to vector<8x32xbf16>
    %c0_5 = arith.constant 0 : index
    %c0_6 = arith.constant 0 : index
    %10 = vector.load %arg4[%c0_5, %c0_6] : memref<32x128xbf16, #tpu.memory_space<vmem>>, vector<32x128xbf16>
    %cst_7 = arith.constant dense<0.000000e+00> : vector<8x128xf32>
    %11 = tpu.matmul %9, %10, %cst_7 {dimension_numbers = #tpu.dot_dimension_numbers<[1], [0], [0], [1], [0, 0, 1, 1], [], []>} : vector<8x32xbf16>, vector<32x128xbf16>, vector<8x128xf32> -> vector<8x128xf32>
    %c0_8 = arith.constant 0 : index
    %c0_9 = arith.constant 0 : index
    %12 = vector.load %arg5[%c0_8, %c0_9] : memref<1x128xf32, #tpu.memory_space<vmem>>, vector<1x128xf32>
    %13 = vector.broadcast %12 : vector<1x128xf32> to vector<8x128xf32>
    %14 = arith.addf %11, %13 : vector<8x128xf32>
    %cst_10 = arith.constant 0.000000e+00 : f32
    %15 = vector.broadcast %cst_10 : f32 to vector<8x128xf32>
    %16 = arith.maximumf %14, %15 : vector<8x128xf32>
    %17 = arith.truncf %16 : vector<8x128xf32> to vector<8x128xbf16>
    %c0_11 = arith.constant 0 : index
    %c0_12 = arith.constant 0 : index
    %18 = vector.load %arg6[%c0_11, %c0_12] : memref<128x128xbf16, #tpu.memory_space<vmem>>, vector<128x128xbf16>
    %cst_13 = arith.constant dense<0.000000e+00> : vector<8x128xf32>
    %19 = tpu.matmul %17, %18, %cst_13 {dimension_numbers = #tpu.dot_dimension_numbers<[1], [0], [0], [1], [0, 0, 1, 1], [], []>} : vector<8x128xbf16>, vector<128x128xbf16>, vector<8x128xf32> -> vector<8x128xf32>
    %c0_14 = arith.constant 0 : index
    %c0_15 = arith.constant 0 : index
    %20 = vector.load %arg7[%c0_14, %c0_15] : memref<1x128xf32, #tpu.memory_space<vmem>>, vector<1x128xf32>
    %21 = vector.broadcast %20 : vector<1x128xf32> to vector<8x128xf32>
    %22 = arith.addf %19, %21 : vector<8x128xf32>
    %cst_16 = arith.constant 0.000000e+00 : f32
    %23 = vector.broadcast %cst_16 : f32 to vector<8x128xf32>
    %24 = arith.maximumf %22, %23 : vector<8x128xf32>
    %25 = arith.truncf %24 : vector<8x128xf32> to vector<8x128xbf16>
    %c0_17 = arith.constant 0 : index
    %c0_18 = arith.constant 0 : index
    %26 = vector.load %arg8[%c0_17, %c0_18] : memref<128x128xbf16, #tpu.memory_space<vmem>>, vector<128x128xbf16>
    %cst_19 = arith.constant dense<0.000000e+00> : vector<8x128xf32>
    %27 = tpu.matmul %25, %26, %cst_19 {dimension_numbers = #tpu.dot_dimension_numbers<[1], [0], [0], [1], [0, 0, 1, 1], [], []>} : vector<8x128xbf16>, vector<128x128xbf16>, vector<8x128xf32> -> vector<8x128xf32>
    %c0_20 = arith.constant 0 : index
    %c0_21 = arith.constant 0 : index
    %28 = vector.load %arg9[%c0_20, %c0_21] : memref<1x128xf32, #tpu.memory_space<vmem>>, vector<1x128xf32>
    %29 = vector.broadcast %28 : vector<1x128xf32> to vector<8x128xf32>
    %30 = arith.addf %27, %29 : vector<8x128xf32>
    %cst_22 = arith.constant 0.000000e+00 : f32
    %31 = vector.broadcast %cst_22 : f32 to vector<8x128xf32>
    %32 = arith.maximumf %30, %31 : vector<8x128xf32>
    %33 = arith.truncf %32 : vector<8x128xf32> to vector<8x128xbf16>
    %c0_23 = arith.constant 0 : index
    %c0_24 = arith.constant 0 : index
    %34 = vector.load %arg10[%c0_23, %c0_24] : memref<128x128xbf16, #tpu.memory_space<vmem>>, vector<128x128xbf16>
    %cst_25 = arith.constant dense<0.000000e+00> : vector<8x128xf32>
    %35 = tpu.matmul %33, %34, %cst_25 {dimension_numbers = #tpu.dot_dimension_numbers<[1], [0], [0], [1], [0, 0, 1, 1], [], []>} : vector<8x128xbf16>, vector<128x128xbf16>, vector<8x128xf32> -> vector<8x128xf32>
    %c0_26 = arith.constant 0 : index
    %c0_27 = arith.constant 0 : index
    %36 = vector.load %arg11[%c0_26, %c0_27] : memref<1x128xf32, #tpu.memory_space<vmem>>, vector<1x128xf32>
    %37 = vector.broadcast %36 : vector<1x128xf32> to vector<8x128xf32>
    %38 = arith.addf %35, %37 : vector<8x128xf32>
    %39 = vector.extract_strided_slice %38 {offsets = [0, 0], sizes = [8, 16], strides = [1, 1]} : vector<8x128xf32> to vector<8x16xf32>
    %c0_28 = arith.constant 0 : index
    %c0_29 = arith.constant 0 : index
    %40 = vector.load %arg12[%c0_28, %c0_29] : memref<8x16xf32, #tpu.memory_space<vmem>>, vector<8x16xf32>
    tpu.vector_store %arg12[%c0_28, %c0_29], %39 {strides = array<i32>} : memref<8x16xf32, #tpu.memory_space<vmem>>, vector<8x16xf32>,
    return
  }
  func.func @transform_0(%arg0: i32) -> (i32, i32) {
    %c0_i32 = arith.constant 0 : i32
    %c0_i32_0 = arith.constant 0 : i32
    return %arg0, %c0_i32 : i32, i32
  }
  func.func @transform_1(%arg0: i32) -> (i32, i32) {
    %c0_i32 = arith.constant 0 : i32
    %c0_i32_0 = arith.constant 0 : i32
    %c0_i32_1 = arith.constant 0 : i32
    return %c0_i32, %c0_i32_0 : i32, i32
  }
  func.func @transform_2(%arg0: i32) -> (i32, i32) {
    %c0_i32 = arith.constant 0 : i32
    %c0_i32_0 = arith.constant 0 : i32
    %c0_i32_1 = arith.constant 0 : i32
    return %c0_i32, %c0_i32_0 : i32, i32
  }
  func.func @transform_3(%arg0: i32) -> (i32, i32) {
    %c0_i32 = arith.constant 0 : i32
    %c0_i32_0 = arith.constant 0 : i32
    %c0_i32_1 = arith.constant 0 : i32
    return %c0_i32, %c0_i32_0 : i32, i32
  }
  func.func @transform_4(%arg0: i32) -> (i32, i32) {
    %c0_i32 = arith.constant 0 : i32
    %c0_i32_0 = arith.constant 0 : i32
    %c0_i32_1 = arith.constant 0 : i32
    return %c0_i32, %c0_i32_0 : i32, i32
  }
  func.func @transform_5(%arg0: i32) -> (i32, i32) {
    %c0_i32 = arith.constant 0 : i32
    %c0_i32_0 = arith.constant 0 : i32
    %c0_i32_1 = arith.constant 0 : i32
    return %c0_i32, %c0_i32_0 : i32, i32
  }
  func.func @transform_6(%arg0: i32) -> (i32, i32) {
    %c0_i32 = arith.constant 0 : i32
    %c0_i32_0 = arith.constant 0 : i32
    %c0_i32_1 = arith.constant 0 : i32
    return %c0_i32, %c0_i32_0 : i32, i32
  }
  func.func @transform_7(%arg0: i32) -> (i32, i32) {
    %c0_i32 = arith.constant 0 : i32
    %c0_i32_0 = arith.constant 0 : i32
    %c0_i32_1 = arith.constant 0 : i32
    return %c0_i32, %c0_i32_0 : i32, i32
  }
  func.func @transform_8(%arg0: i32) -> (i32, i32) {
    %c0_i32 = arith.constant 0 : i32
    %c0_i32_0 = arith.constant 0 : i32
    %c0_i32_1 = arith.constant 0 : i32
    return %c0_i32, %c0_i32_0 : i32, i32
  }
  func.func @transform_9(%arg0: i32) -> (i32, i32) {
    %c0_i32 = arith.constant 0 : i32
    %c0_i32_0 = arith.constant 0 : i32
    %c0_i32_1 = arith.constant 0 : i32
    return %c0_i32, %c0_i32_0 : i32, i32
  }
  func.func @transform_10(%arg0: i32) -> (i32, i32) {
    %c0_i32 = arith.constant 0 : i32
    %c0_i32_0 = arith.constant 0 : i32
    %c0_i32_1 = arith.constant 0 : i32
    return %c0_i32, %c0_i32_0 : i32, i32
  }
  func.func @transform_11(%arg0: i32) -> (i32, i32) {
    %c0_i32 = arith.constant 0 : i32
    %c0_i32_0 = arith.constant 0 : i32
    return %arg0, %c0_i32 : i32, i32
  }
}

</mosaic_0001>

<bundles_post_ra>
// kernel: block_forward.1
= control target key start
LH: loop header
LB: loop body
LE: loop exit
PB: predicated region body
PF: predicated region fallthrough
CT: control target
= control target key end

     0   :  { %v665_v1 = vmov 0.0   ;;  %vm666_vm0 = vmmov 0   ;;  %vm82_vm1 = vcmask 261120   ;;  %s873_s0 = inlined_call_operand.vmem [shape: f32[8,32], index: 0, kind: input, shape index: {}]   ;;  %s874_s1 = inlined_call_operand.vmem [shape: f32[1,32], index: 1, kind: input, shape index: {}]   ;;  %s875_s2 = inlined_call_operand.vmem [shape: f32[1,32], index: 2, kind: input, shape index: {}]   ;;  %s876_s3 = inlined_call_operand.vmem [shape: bf16[32,128], index: 3, kind: input, shape index: {}]   ;;  %s877_s4 = inlined_call_operand.vmem [shape: f32[1,128], index: 4, kind: input, shape index: {}]   ;;  %s878_s5 = inlined_call_operand.vmem [shape: bf16[128,128], index: 5, kind: input, shape index: {}]   ;;  %s879_s6 = inlined_call_operand.vmem [shape: f32[1,128], index: 6, kind: input, shape index: {}]   ;;  %s880_s7 = inlined_call_operand.vmem [shape: bf16[128,128], index: 7, kind: input, shape index: {}]   ;;  %s881_s8 = inlined_call_operand.vmem [shape: f32[1,128], index: 8, kind: input, shape index: {}]   ;;  %s882_s9 = inlined_call_operand.vmem [shape: bf16[128,128], index: 9, kind: input, shape index: {}]   ;;  %s883_s10 = inlined_call_operand.vmem [shape: f32[1,128], index: 10, kind: input, shape index: {}]   ;;  %s884_s11 = inlined_call_operand.hbm [shape: f32[8,16], index: 11, kind: output, shape index: {}]  }
   0x1   :  { %v615_v0 = vld [vmem:[%s876_s3] sm:$0xff]   ;;  %544 = vmatprep.subr.bf16.mxu0 %v665_v1  ;;  %v616_v2 = vld [vmem:[%s876_s3 + $0x8] sm:$0xff]   ;;  %552 = vmatprep.subr.bf16.mxu1 %v665_v1  ;;  %v619_v12 = vld [vmem:[%s878_s5 + $0x10] sm:$0xff]  }
   0x2   :  { %545 = vmatpush3.bf16.msra.mxu0 %v615_v0  ;;  %548 = vmatprep.mubr.msk.bf16.mxu0 %vm666_vm0, %v665_v1  ;;  %v40_v3 = vld [vmem:[%s873_s0] sm:$0xff]  ;;  %v618_v9 = vld [vmem:[%s878_s5 + $0x8] sm:$0xff]   ;;  %v620_v13 = vld [vmem:[%s878_s5 + $0x18] sm:$0xff]  }
   0x3   :  { %v481_v4 = vld [vmem:[%s874_s1] ss:$0 sm:$0xff]  ;;  %546 = vmatprep.subr.bf16.mxu0 %v665_v1  ;;  %568 = vmatprep.mubr.msk.bf16.mxu1 %vm666_vm0, %v665_v1  ;;  %v622_v15 = vld [vmem:[%s878_s5 + $0x28] sm:$0xff]  }
   0x4   :  { %v482_v5 = vld [vmem:[%s875_s2] ss:$0 sm:$0xff]  ;;  %v48_v6 = vmul.f32 %v481_v4, %v40_v3 }
   0x5   :  { %v617_v7 = vld [vmem:[%s878_s5] sm:$0xff]  }
   0x6   :  { %v56_v8 = vadd.f32 %v482_v5, %v48_v6  ;;  %553 = vmatpush3.bf16.msra.mxu1 %v617_v7  ;;  %547 = vmatpush3.bf16.msra.mxu0 %v616_v2  ;;  %v621_v14 = vld [vmem:[%s878_s5 + $0x20] sm:$0xff]  }
   0x7   :  { %554 = vmatprep.subr.bf16.mxu1 %v665_v1  ;;  %572 = vmatprep.subr.bf16.mxu0 %v665_v1 }
   0x8   :  { %v57_v10 = vmax.f32 %v56_v8, 0.0 }
   0xa   :  { %v58_v11 = vpack.c.bf16 %v57_v10, %v57_v10  ;;  %555 = vmatpush3.bf16.msra.mxu1 %v618_v9 }
   0xb   :  { %556 = vmatprep.subr.bf16.mxu1 %v665_v1 }
   0xc   :  { %549 = vmatmul.mubr.msk.bf16.vlgmr.msra.gmra.mrb[0].mxu0 %vm82_vm1, %v58_v11 }
   0xd   :  { %588 = vmatprep.mubr.msk.bf16.mxu0 %vm666_vm0, %v665_v1 }
   0xe   :  { %557 = vmatpush3.bf16.msra.mxu1 %v619_v12 }
   0xf   :  { %558 = vmatprep.subr.bf16.mxu1 %v665_v1 }
  0x12   :  { %559 = vmatpush3.bf16.msra.mxu1 %v620_v13 }
  0x13   :  { %560 = vmatprep.subr.bf16.mxu1 %v665_v1 }
  0x16   :  { %561 = vmatpush3.bf16.msra.mxu1 %v621_v14 }
  0x17   :  { %16 = vsyncpa [#allocation3], 0  ;;  %562 = vmatprep.subr.bf16.mxu1 %v665_v1  ;;  %v623_v16 = vld [vmem:[%s878_s5 + $0x30] sm:$0xff]   ;;  %v624_v17 = vld [vmem:[%s878_s5 + $0x38] sm:$0xff]   ;;  %s667_s2 = smov [#allocation2]   ;;  %vm465_vm2 = vcmask 130048  }
  0x18   :  { %v625_v18 = vld [vmem:[%s880_s7] sm:$0xff]   ;;  %v626_v19 = vld [vmem:[%s880_s7 + $0x8] sm:$0xff]   ;;  %v627_v20 = vld [vmem:[%s880_s7 + $0x10] sm:$0xff]   ;;  %s473_s29 = sshll.u32 %s667_s2, 4  ;;  %s474_s29 = int_to_ptr.vmem [resolvable:$true] %s473_s29 }
  0x19   :  { %573 = vmatpush3.bf16.msra.mxu0 %v625_v18  ;;  %v628_v21 = vld [vmem:[%s880_s7 + $0x18] sm:$0xff]   ;;  %v629_v22 = vld [vmem:[%s880_s7 + $0x20] sm:$0xff]   ;;  %v630_v23 = vld [vmem:[%s880_s7 + $0x28] sm:$0xff]   ;;  %p646_p1 = scmp.lt.s32.totalorder %s474_s29, %s474_s29 }
  0x1a   :  { %563 = vmatpush3.bf16.msra.mxu1 %v622_v15  ;;  %574 = vmatprep.subr.bf16.mxu0 %v665_v1  ;;  %v483_v24 = vld [vmem:[%s877_s4] ss:$0 sm:$0xff]  ;;  %v631_v32 = vld [vmem:[%s880_s7 + $0x30] sm:$0xff]   ;;  %v632_v33 = vld [vmem:[%s880_s7 + $0x38] sm:$0xff]  }
  0x1b   :  { %564 = vmatprep.subr.bf16.mxu1 %v665_v1  ;;  %v633_v34 = vld [vmem:[%s882_s9] sm:$0xff]   ;;  %v634_v35 = vld [vmem:[%s882_s9 + $0x8] sm:$0xff]   ;;  %v635_v36 = vld [vmem:[%s882_s9 + $0x10] sm:$0xff]  }
  0x1c   :  { %v636_v37 = vld [vmem:[%s882_s9 + $0x18] sm:$0xff]   ;;  %v637_v38 = vld [vmem:[%s882_s9 + $0x20] sm:$0xff]   ;;  %v638_v39 = vld [vmem:[%s882_s9 + $0x28] sm:$0xff]  }
  0x1d   :  { %575 = vmatpush3.bf16.msra.mxu0 %v626_v19  ;;  %v487_v40 = vld [vmem:[%s879_s6] ss:$0 sm:$0xff]  ;;  %v639_v48 = vld [vmem:[%s882_s9 + $0x30] sm:$0xff]   ;;  %v640_v49 = vld [vmem:[%s882_s9 + $0x38] sm:$0xff]  }
  0x1e   :  { %565 = vmatpush3.bf16.msra.mxu1 %v623_v16  ;;  %576 = vmatprep.subr.bf16.mxu0 %v665_v1  ;;  %v496_v50 = vld [vmem:[%s881_s8] ss:$0 sm:$0xff]  ;;  %s641_s8 = scalar_lea.vmem %s474_s29, 128 }
  0x1f   :  { %566 = vmatprep.subr.bf16.mxu1 %v665_v1  ;;  %v505_v58 = vld [vmem:[%s883_s10] ss:$0 sm:$0xff]  ;;  %p642_p0 = scmp.ne.s32.totalorder %s474_s29, %s641_s8  ;;  %p647_p2 = scmp.lt.s32.totalorder %s641_s8, %s641_s8 }
  0x21   :  { %577 = vmatpush3.bf16.msra.mxu0 %v627_v20  ;;  %p648_p3 = por %p647_p2, %p646_p1 }
  0x22   :  { %567 = vmatpush3.bf16.msra.mxu1 %v624_v17  ;;  %578 = vmatprep.subr.bf16.mxu0 %v665_v1 }
  0x23   :  { %592 = vmatprep.subr.bf16.mxu1 %v665_v1  ;;  %p649_p4 = pnand %p648_p3, %p642_p0 }
  0x25   :  { %579 = vmatpush3.bf16.msra.mxu0 %v628_v21 }
  0x26   :  { %580 = vmatprep.subr.bf16.mxu0 %v665_v1 }
  0x29   :  { %581 = vmatpush3.bf16.msra.mxu0 %v629_v22 }
  0x2a   :  { %582 = vmatprep.subr.bf16.mxu0 %v665_v1 }
  0x2d   :  { %583 = vmatpush3.bf16.msra.mxu0 %v630_v23 }
  0x2e   :  { %584 = vmatprep.subr.bf16.mxu0 %v665_v1 }
  0x31   :  { %585 = vmatpush3.bf16.msra.mxu0 %v631_v32 }
  0x32   :  { %586 = vmatprep.subr.bf16.mxu0 %v665_v1 }
  0x35   :  { %587 = vmatpush3.bf16.msra.mxu0 %v632_v33 }
  0xdf   :  { %v120_v25 = vpop.f32.mrb[0].mxu0 }
  0xe0   :  { %v121_v26 = vadd.f32 %v483_v24, %v120_v25  ;;  %v550_v27 = vpop.f32.mrb[1].mxu0 }
  0xe1   :  { %v123_v28 = vpop.f32.mrb[2].mxu0 }
  0xe2   :  { %v126_v29 = vmax.f32 %v121_v26, 0.0  ;;  %v551_v30 = vpop.f32.mrb[3].mxu0 }
  0xe4   :  { %v127_v31 = vpack.c.bf16 %v126_v29, %v126_v29 }
  0xe6   :  { %569 = vmatmul.mubr.bf16.vlgmr.msra.gmra.mrb[0].mxu1 %v127_v31 }
  0xe7   :  { %608 = vmatprep.mubr.msk.bf16.mxu1 %vm666_vm0, %v665_v1  ;;  %593 = vmatpush3.bf16.msra.mxu1 %v633_v34 }
  0xe8   :  { %594 = vmatprep.subr.bf16.mxu1 %v665_v1 }
  0xeb   :  { %595 = vmatpush3.bf16.msra.mxu1 %v634_v35 }
  0xec   :  { %596 = vmatprep.subr.bf16.mxu1 %v665_v1 }
  0xef   :  { %597 = vmatpush3.bf16.msra.mxu1 %v635_v36 }
  0xf0   :  { %598 = vmatprep.subr.bf16.mxu1 %v665_v1 }
  0xf3   :  { %599 = vmatpush3.bf16.msra.mxu1 %v636_v37 }
  0xf4   :  { %600 = vmatprep.subr.bf16.mxu1 %v665_v1 }
  0xf7   :  { %601 = vmatpush3.bf16.msra.mxu1 %v637_v38 }
  0xf8   :  { %602 = vmatprep.subr.bf16.mxu1 %v665_v1 }
  0xfb   :  { %603 = vmatpush3.bf16.msra.mxu1 %v638_v39 }
  0xfc   :  { %604 = vmatprep.subr.bf16.mxu1 %v665_v1 }
  0xff   :  { %605 = vmatpush3.bf16.msra.mxu1 %v639_v48 }
 0x100   :  { %606 = vmatprep.subr.bf16.mxu1 %v665_v1 }
 0x103   :  { %607 = vmatpush3.bf16.msra.mxu1 %v640_v49 }
 0x1b9   :  { %v233_v41 = vpop.f32.mrb[0].mxu1 }
 0x1ba   :  { %v234_v42 = vadd.f32 %v487_v40, %v233_v41  ;;  %v570_v43 = vpop.f32.mrb[1].mxu1 }
 0x1bb   :  { %v236_v44 = vpop.f32.mrb[2].mxu1 }
 0x1bc   :  { %v239_v45 = vmax.f32 %v234_v42, 0.0  ;;  %v571_v46 = vpop.f32.mrb[3].mxu1 }
 0x1be   :  { %v240_v47 = vpack.c.bf16 %v239_v45, %v239_v45 }
 0x1c0   :  { %589 = vmatmul.mubr.bf16.vlgmr.msra.gmra.mrb[4].mxu0 %v240_v47 }
 0x293   :  { %v346_v51 = vpop.f32.mrb[4].mxu0 }
 0x294   :  { %v347_v52 = vadd.f32 %v496_v50, %v346_v51  ;;  %v590_v53 = vpop.f32.mrb[5].mxu0 }
 0x295   :  { %v349_v54 = vpop.f32.mrb[6].mxu0 }
 0x296   :  { %v352_v55 = vmax.f32 %v347_v52, 0.0  ;;  %v591_v56 = vpop.f32.mrb[7].mxu0 }
 0x298   :  { %v353_v57 = vpack.c.bf16 %v352_v55, %v352_v55 }
 0x29a   :  { %609 = vmatmul.mubr.bf16.vlgmr.msra.gmra.mrb[4].mxu1 %v353_v57 }
 0x36d   :  { %v459_v59 = vpop.f32.mrb[4].mxu1 }
 0x36e   :  { %v460_v60 = vadd.f32 %v505_v58, %v459_v59  ;;  %v610_v61 = vpop.f32.mrb[5].mxu1 }
 0x36f   :  { %v462_v62 = vpop.f32.mrb[6].mxu1 }
 0x370   :  { %v611_v63 = vpop.f32.mrb[7].mxu1  ;;  %466 = vst.msk [vmem:[#allocation2] sm:$0xff] %vm465_vm2, %v460_v60 }
 0x371   :  { %652 = shalt.err (!%p649_p4)
}
 0x372   :  { %s653_s10 = scalar_lea.hbm %s884_s11, 128 }
 0x373   :  { %p654_p5 = scmp.ne.s32.totalorder %s884_s11, %s653_s10  ;;  %p657_p6 = scmp.lt.u32.totalorder %s653_s10, %s884_s11 }
 0x375   :  { %p659_p7 = pnand %p657_p6, %p654_p5 }
 0x377   :  { %662 = shalt.err (!%p659_p7)
}
 0x378   :  { %476 = dma.vmem_to_hbm [thread:$0]  %s474_s29, 128, %s884_s11, [#allocation3]  }
 0x379   :  { %663 = dma.done.wait [#allocation3], 128  }
 0x37a   :  { %664 = vsyncadd [#allocation3], 4294967168 }
 0x37b   :  { %480 = vsyncpa [#allocation3], 1 }

</bundles_post_ra>
